<compile_context>
chip_gen: v6e
topology: v6e:2x2x1
jax: 0.10.0
libtpu: 0.0.40
codegen_flags: <defaults>
</compile_context>

<pallas_src>
import functools
import math

import jax
import jax.numpy as jnp
from jax import lax
from jax.experimental import pallas as pl
from jax.experimental.pallas import tpu as pltpu

_LANE = 128


def _softplus(x):
    # Numerically stable softplus using only exp/log (robust Mosaic lowering);
    # matches torch.nn.functional.softplus / jax.nn.softplus to ~1e-7 abs.
    return jnp.maximum(x, 0.0) + jnp.log(1.0 + jnp.exp(-jnp.abs(x)))


def _mlp_kernel(x_ref, w1_ref, b1_ref, w2_ref, b2_ref, w3_ref, b3_ref,
                conc_ref, *, matmul_dtype):
    """One batch tile of the concentration ("shape") MLP.

    Layouts (TB = batch tile; batch is the lane / fast axis of every
    intermediate and of the output store):
      x_ref    : (TB, in_dim)   natural layout -- no wrapper pad/transpose
      w*_ref   : (out_f, in_f)  transposed weights, VMEM-resident across grid
      b*_ref   : (out_f, 1)     f32 biases, added after accumulation
      conc_ref : (out_dim, TB)  lane-dense output tile
    """
    x = x_ref[...].astype(matmul_dtype)                          # (TB, in)

    # Layer 1: contract on x's last axis -> (h1, TB) lane-dense.
    z1 = lax.dot_general(w1_ref[...], x, (((1,), (1,)), ((), ())),
                         preferred_element_type=jnp.float32)
    h1 = jnp.tanh(z1 + b1_ref[...])                              # (h1, TB)

    z2 = jnp.dot(w2_ref[...], h1.astype(matmul_dtype),
                 preferred_element_type=jnp.float32)
    h2 = jnp.tanh(z2 + b2_ref[...])                              # (h2, TB)

    z3 = jnp.dot(w3_ref[...], h2.astype(matmul_dtype),
                 preferred_element_type=jnp.float32)
    conc_ref[...] = _softplus(z3 + b3_ref[...]).astype(conc_ref.dtype)


def _select_batch_tile(batch, tile_b):
    """Pick a lane-aligned batch tile and grid size.

    Big tiles amortize the ~0.35 us per-grid-step overhead; when the batch is
    large enough we keep >=2 grid steps so dimension_semantics=("parallel",)
    can shard across v7x's two TensorCores (harmless on v5e/v6e).
    """
    if batch <= 2 * _LANE:
        return batch, 1                         # single exact block
    half = ((batch + 1) // 2 + _LANE - 1) // _LANE * _LANE
    tb = min(max(_LANE, (tile_b // _LANE) * _LANE), half)
    return tb, (batch + tb - 1) // tb


def gamma_mlp_forward(x, params, *, min_scale=1e-6, max_scale=None,
                      scale_parameterization="exp", tile_b=8192,
                      matmul_dtype=jnp.bfloat16, batch_major_output=True):
    """Forward pass of GammaMLPBaseModule.

    Returns (concentration, rate):
      concentration : (batch, out_dim)   (or (out_dim, batch) if
                      batch_major_output=False, which skips one output pass)
      rate          : (out_dim,)  batch-invariant row; broadcast against
                      `concentration` for the full Gamma rate.
    These are the parameters of Independent(Gamma(concentration, rate), 1).
    """
    w1, b1, w2, b2, w3, b3, log_scale = params
    batch, in_dim = x.shape
    out_dim = w3.shape[1]

    tb, num_tiles = _select_batch_tile(batch, tile_b)

    # One-time, tiny operand prep; weights/biases stay VMEM-resident.
    w1_t = w1.T.astype(matmul_dtype)                  # (h1, in)
    w2_t = w2.T.astype(matmul_dtype)                  # (h2, h1)
    w3_t = w3.T.astype(matmul_dtype)                  # (out, h2)
    b1_t = b1.reshape(-1, 1).astype(jnp.float32)      # (h1, 1)
    b2_t = b2.reshape(-1, 1).astype(jnp.float32)      # (h2, 1)
    b3_t = b3.reshape(-1, 1).astype(jnp.float32)      # (out, 1)

    resident = lambda a: pl.BlockSpec(a.shape, lambda i: (0, 0))

    conc_t = pl.pallas_call(
        functools.partial(_mlp_kernel, matmul_dtype=matmul_dtype),
        out_shape=jax.ShapeDtypeStruct((out_dim, batch), jnp.float32),
        grid=(num_tiles,),
        in_specs=[
            pl.BlockSpec((tb, in_dim), lambda i: (i, 0)),   # x tile, pipelined
            resident(w1_t), resident(b1_t),
            resident(w2_t), resident(b2_t),
            resident(w3_t), resident(b3_t),
        ],
        out_specs=pl.BlockSpec((out_dim, tb), lambda i: (0, i)),
        compiler_params=pltpu.CompilerParams(
            dimension_semantics=("parallel",),   # v7x megacore sharding
        ),
    )(x, w1_t, b1_t, w2_t, b2_t, w3_t, b3_t)

    conc = conc_t.T if batch_major_output else conc_t

    # Rate is batch-invariant: computed once on the (out_dim,) row and NOT
    # broadcast/materialized (the caller broadcasts lazily if needed).
    ls = log_scale.reshape(-1).astype(jnp.float32)
    if min_scale is not None:
        ls = jnp.maximum(ls, math.log(min_scale))
    if max_scale is not None:
        ls = jnp.minimum(ls, math.log(max_scale))
    if scale_parameterization == "exp":
        rate = jnp.exp(-ls)                           # 1 / exp(log_scale)
    elif scale_parameterization == "softplus":
        rate = 1.0 / jnp.log1p(jnp.exp(jnp.exp(ls)))  # 1 / softplus(exp(ls))
    else:
        raise NotImplementedError(scale_parameterization)
    return conc, rate


# ----------------------------- test harness ---------------------------------

def xavier_uniform(key, fan_in, fan_out, dtype=jnp.float32):
    limit = math.sqrt(6.0 / (fan_in + fan_out))
    return jax.random.uniform(key, (fan_in, fan_out), dtype, -limit, limit)


def init_params(key, input_dim, output_dim, hidden_sizes=(32, 32),
                init_scale=0.5):
    k1, k2, k3 = jax.random.split(key, 3)
    h1, h2 = hidden_sizes
    w1 = xavier_uniform(k1, input_dim, h1)
    b1 = jnp.zeros((1, h1), jnp.float32)
    w2 = xavier_uniform(k2, h1, h2)
    b2 = jnp.zeros((1, h2), jnp.float32)
    w3 = xavier_uniform(k3, h2, output_dim)
    b3 = jnp.zeros((1, output_dim), jnp.float32)
    log_scale = jnp.full((1, output_dim), math.log(init_scale), jnp.float32)
    return (w1, b1, w2, b2, w3, b3, log_scale)


def reference_forward(x, params, *, min_scale=1e-6, max_scale=None):
    """Pure-JAX f32 reference of the module's forward (full rate array)."""
    w1, b1, w2, b2, w3, b3, log_scale = params
    h = jnp.tanh(x @ w1 + b1)
    h = jnp.tanh(h @ w2 + b2)
    shape = jax.nn.softplus(h @ w3 + b3)
    ls = jnp.broadcast_to(log_scale, shape.shape)
    if min_scale is not None:
        ls = jnp.maximum(ls, math.log(min_scale))
    if max_scale is not None:
        ls = jnp.minimum(ls, math.log(max_scale))
    return shape, 1.0 / jnp.exp(ls)


if __name__ == "__main__":
    INPUT_DIM, OUTPUT_DIM, BATCH = 16, 8, 8
    key = jax.random.PRNGKey(0)
    k_params, k_x, k_x2 = jax.random.split(key, 3)

    params = init_params(k_params, INPUT_DIM, OUTPUT_DIM, hidden_sizes=(32, 32))

    # Tolerance note: the MXU computes bf16-operand (and pass-decomposed f32)
    # matmuls, and XLA's own TPU default for f32 dots is reduced precision, so
    # a few e-3 .. ~2e-2 deviation from the pure-f32 reference is expected.
    # A genuinely wrong kernel produces O(0.1-1) errors, so these still catch bugs.
    TOL = dict(atol=5e-2, rtol=5e-2)

    # 1) Tiny batch, single exact block, f32 matmul operands.
    x = jax.random.normal(k_x, (BATCH, INPUT_DIM), jnp.float32)
    conc, rate = gamma_mlp_forward(x, params, matmul_dtype=jnp.float32)
    jax.block_until_ready((conc, rate))
    ref_conc, ref_rate = reference_forward(x, params)
    assert conc.shape == (BATCH, OUTPUT_DIM) and rate.shape == (OUTPUT_DIM,)
    assert jnp.allclose(conc, ref_conc, **TOL)
    assert jnp.allclose(jnp.broadcast_to(rate, ref_rate.shape), ref_rate,
                        atol=1e-6, rtol=1e-6)

    # 2) Non-multiple batch -> multi-step grid with a partial edge block,
    #    default bf16 matmul operands (f32 accumulate).  tb=256, grid=2.
    x2 = jax.random.normal(k_x2, (300, INPUT_DIM), jnp.float32)
    conc2, rate2 = gamma_mlp_forward(x2, params)
    jax.block_until_ready((conc2, rate2))
    ref_conc2, ref_rate2 = reference_forward(x2, params)
    assert conc2.shape == (300, OUTPUT_DIM)
    assert jnp.allclose(conc2, ref_conc2, **TOL)
    assert jnp.allclose(jnp.broadcast_to(rate2, ref_rate2.shape), ref_rate2,
                        atol=1e-6, rtol=1e-6)

    # 3) Same batch, smaller tile -> 3 grid steps, f32 operand path,
    #    transposed (out_dim, batch) output layout (no wrapper transpose).
    conc3_t, _ = gamma_mlp_forward(x2, params, tile_b=128,
                                   matmul_dtype=jnp.float32,
                                   batch_major_output=False)
    jax.block_until_ready(conc3_t)
    assert conc3_t.shape == (OUTPUT_DIM, 300)
    assert jnp.allclose(conc3_t.T, ref_conc2, **TOL)

    # TODO(synk): constructing torch.distributions.Independent(Gamma(...), 1)
    # itself has no Pallas equivalent; the kernel returns its parameters.
    print("KERNEL_OK")
</pallas_src>

<mosaic_0001>
module attributes {stable_mosaic.version = 11 : i64} {
  func.func @_mlp_kernel(%arg0: i32, %arg1: memref<8x16xf32, #tpu.memory_space<vmem>>, %arg2: memref<32x16xf32, #tpu.memory_space<vmem>>, %arg3: memref<32x1xf32, #tpu.memory_space<vmem>>, %arg4: memref<32x32xf32, #tpu.memory_space<vmem>>, %arg5: memref<32x1xf32, #tpu.memory_space<vmem>>, %arg6: memref<8x32xf32, #tpu.memory_space<vmem>>, %arg7: memref<8x1xf32, #tpu.memory_space<vmem>>, %arg8: memref<8x8xf32, #tpu.memory_space<vmem>>) attributes {dimension_semantics = [#tpu.dimension_semantics<parallel>], iteration_bounds = array<i64: 1>, scalar_prefetch = 0 : i64, scratch_operands = 0 : i64, tpu.core_type = #tpu.core_type<tc>, window_params = [{transform_indices = @transform_0, window_bounds = array<i64: 8, 16>}, {pipeline_mode = #tpu.pipeline_mode<synchronous>, transform_indices = @transform_1, window_bounds = array<i64: 32, 16>}, {pipeline_mode = #tpu.pipeline_mode<synchronous>, transform_indices = @transform_2, window_bounds = array<i64: 32, 1>}, {pipeline_mode = #tpu.pipeline_mode<synchronous>, transform_indices = @transform_3, window_bounds = array<i64: 32, 32>}, {pipeline_mode = #tpu.pipeline_mode<synchronous>, transform_indices = @transform_4, window_bounds = array<i64: 32, 1>}, {pipeline_mode = #tpu.pipeline_mode<synchronous>, transform_indices = @transform_5, window_bounds = array<i64: 8, 32>}, {pipeline_mode = #tpu.pipeline_mode<synchronous>, transform_indices = @transform_6, window_bounds = array<i64: 8, 1>}, {transform_indices = @transform_7, window_bounds = array<i64: 8, 8>}]} {
    %c0 = arith.constant 0 : index
    %c0_0 = arith.constant 0 : index
    %0 = vector.load %arg1[%c0, %c0_0] : memref<8x16xf32, #tpu.memory_space<vmem>>, vector<8x16xf32>
    %c0_1 = arith.constant 0 : index
    %c0_2 = arith.constant 0 : index
    %1 = vector.load %arg2[%c0_1, %c0_2] : memref<32x16xf32, #tpu.memory_space<vmem>>, vector<32x16xf32>
    %cst = arith.constant dense<0.000000e+00> : vector<32x8xf32>
    %2 = tpu.matmul %1, %0, %cst {dimension_numbers = #tpu.dot_dimension_numbers<[1], [1], [0], [0], [0, 0, 1, 0], [], []>} : vector<32x16xf32>, vector<8x16xf32>, vector<32x8xf32> -> vector<32x8xf32>
    %c0_3 = arith.constant 0 : index
    %c0_4 = arith.constant 0 : index
    %3 = vector.load %arg3[%c0_3, %c0_4] : memref<32x1xf32, #tpu.memory_space<vmem>>, vector<32x1xf32>
    %4 = vector.broadcast %3 : vector<32x1xf32> to vector<32x8xf32>
    %5 = arith.addf %2, %4 : vector<32x8xf32>
    %6 = math.tanh %5 : vector<32x8xf32>
    %c0_5 = arith.constant 0 : index
    %c0_6 = arith.constant 0 : index
    %7 = vector.load %arg4[%c0_5, %c0_6] : memref<32x32xf32, #tpu.memory_space<vmem>>, vector<32x32xf32>
    %cst_7 = arith.constant dense<0.000000e+00> : vector<32x8xf32>
    %8 = tpu.matmul %7, %6, %cst_7 {dimension_numbers = #tpu.dot_dimension_numbers<[1], [0], [0], [1], [0, 0, 1, 1], [], []>} : vector<32x32xf32>, vector<32x8xf32>, vector<32x8xf32> -> vector<32x8xf32>
    %c0_8 = arith.constant 0 : index
    %c0_9 = arith.constant 0 : index
    %9 = vector.load %arg5[%c0_8, %c0_9] : memref<32x1xf32, #tpu.memory_space<vmem>>, vector<32x1xf32>
    %10 = vector.broadcast %9 : vector<32x1xf32> to vector<32x8xf32>
    %11 = arith.addf %8, %10 : vector<32x8xf32>
    %12 = math.tanh %11 : vector<32x8xf32>
    %c0_10 = arith.constant 0 : index
    %c0_11 = arith.constant 0 : index
    %13 = vector.load %arg6[%c0_10, %c0_11] : memref<8x32xf32, #tpu.memory_space<vmem>>, vector<8x32xf32>
    %cst_12 = arith.constant dense<0.000000e+00> : vector<8x8xf32>
    %14 = tpu.matmul %13, %12, %cst_12 {dimension_numbers = #tpu.dot_dimension_numbers<[1], [0], [0], [1], [0, 0, 1, 1], [], []>} : vector<8x32xf32>, vector<32x8xf32>, vector<8x8xf32> -> vector<8x8xf32>
    %c0_13 = arith.constant 0 : index
    %c0_14 = arith.constant 0 : index
    %15 = vector.load %arg7[%c0_13, %c0_14] : memref<8x1xf32, #tpu.memory_space<vmem>>, vector<8x1xf32>
    %16 = vector.broadcast %15 : vector<8x1xf32> to vector<8x8xf32>
    %17 = arith.addf %14, %16 : vector<8x8xf32>
    %cst_15 = arith.constant 0.000000e+00 : f32
    %18 = vector.broadcast %cst_15 : f32 to vector<8x8xf32>
    %19 = arith.maximumf %17, %18 : vector<8x8xf32>
    %20 = math.absf %17 : vector<8x8xf32>
    %cst_16 = arith.constant 0.000000e+00 : f32
    %21 = vector.broadcast %cst_16 : f32 to vector<8x8xf32>
    %22 = arith.subf %21, %20 : vector<8x8xf32>
    %23 = math.exp %22 : vector<8x8xf32>
    %cst_17 = arith.constant 1.000000e+00 : f32
    %24 = vector.broadcast %cst_17 : f32 to vector<8x8xf32>
    %25 = arith.addf %24, %23 : vector<8x8xf32>
    %26 = math.log %25 : vector<8x8xf32>
    %27 = arith.addf %19, %26 : vector<8x8xf32>
    %c0_18 = arith.constant 0 : index
    %c0_19 = arith.constant 0 : index
    %28 = vector.load %arg8[%c0_18, %c0_19] : memref<8x8xf32, #tpu.memory_space<vmem>>, vector<8x8xf32>
    tpu.vector_store %arg8[%c0_18, %c0_19], %27 {strides = array<i32>} : memref<8x8xf32, #tpu.memory_space<vmem>>, vector<8x8xf32>,
    return
  }
  func.func @transform_0(%arg0: i32) -> (i32, i32) {
    %c0_i32 = arith.constant 0 : i32
    %c0_i32_0 = arith.constant 0 : i32
    return %arg0, %c0_i32 : i32, i32
  }
  func.func @transform_1(%arg0: i32) -> (i32, i32) {
    %c0_i32 = arith.constant 0 : i32
    %c0_i32_0 = arith.constant 0 : i32
    %c0_i32_1 = arith.constant 0 : i32
    return %c0_i32, %c0_i32_0 : i32, i32
  }
  func.func @transform_2(%arg0: i32) -> (i32, i32) {
    %c0_i32 = arith.constant 0 : i32
    %c0_i32_0 = arith.constant 0 : i32
    %c0_i32_1 = arith.constant 0 : i32
    return %c0_i32, %c0_i32_0 : i32, i32
  }
  func.func @transform_3(%arg0: i32) -> (i32, i32) {
    %c0_i32 = arith.constant 0 : i32
    %c0_i32_0 = arith.constant 0 : i32
    %c0_i32_1 = arith.constant 0 : i32
    return %c0_i32, %c0_i32_0 : i32, i32
  }
  func.func @transform_4(%arg0: i32) -> (i32, i32) {
    %c0_i32 = arith.constant 0 : i32
    %c0_i32_0 = arith.constant 0 : i32
    %c0_i32_1 = arith.constant 0 : i32
    return %c0_i32, %c0_i32_0 : i32, i32
  }
  func.func @transform_5(%arg0: i32) -> (i32, i32) {
    %c0_i32 = arith.constant 0 : i32
    %c0_i32_0 = arith.constant 0 : i32
    %c0_i32_1 = arith.constant 0 : i32
    return %c0_i32, %c0_i32_0 : i32, i32
  }
  func.func @transform_6(%arg0: i32) -> (i32, i32) {
    %c0_i32 = arith.constant 0 : i32
    %c0_i32_0 = arith.constant 0 : i32
    %c0_i32_1 = arith.constant 0 : i32
    return %c0_i32, %c0_i32_0 : i32, i32
  }
  func.func @transform_7(%arg0: i32) -> (i32, i32) {
    %c0_i32 = arith.constant 0 : i32
    %c0_i32_0 = arith.constant 0 : i32
    return %c0_i32, %arg0 : i32, i32
  }
}

</mosaic_0001>

<bundles_post_ra>
// kernel: tpu_custom_call.1
= control target key start
LH: loop header
LB: loop body
LE: loop exit
PB: predicated region body
PF: predicated region fallthrough
CT: control target
= control target key end

     0   :  { %vm56_vm0 = vcmask 130048   ;;  %v505_v4 = vmov 0   ;;  %s620_s0 = inlined_call_operand.vmem [shape: f32[8,16], index: 0, kind: input, shape index: {}]   ;;  %s621_s1 = inlined_call_operand.vmem [shape: f32[32,16], index: 1, kind: input, shape index: {}]   ;;  %s622_s2 = inlined_call_operand.vmem [shape: f32[32,1], index: 2, kind: input, shape index: {}]   ;;  %s623_s3 = inlined_call_operand.vmem [shape: f32[32,32], index: 3, kind: input, shape index: {}]   ;;  %s624_s4 = inlined_call_operand.vmem [shape: f32[32,1], index: 4, kind: input, shape index: {}]   ;;  %s625_s5 = inlined_call_operand.vmem [shape: f32[8,32], index: 5, kind: input, shape index: {}]   ;;  %s626_s6 = inlined_call_operand.vmem [shape: f32[8,1], index: 6, kind: input, shape index: {}]   ;;  %s627_s7 = inlined_call_operand.hbm [shape: f32[8,8], index: 7, kind: output, shape index: {}]  }
   0x1   :  { %v27_v0 = vld [vmem:[%s620_s0] sm:$0xff]  ;;  %v35_v2 = vld [vmem:[%s622_s2 + $0x18] sm:$0xff]  ;;  %v29_v3 = vld [vmem:[%s621_s1 + $0x8] sm:$0xff]  ;;  %461 = vset.pattern.permute.xlu0 %v505_v4  ;;  %462 = vset.pattern.permute.xlu1 %v505_v4 }
   0x2   :  { %v28_v1 = vld [vmem:[%s621_s1] sm:$0xff]  ;;  %424 = vmatprep.subr.msk.mxu0 %vm56_vm0, %v27_v0  ;;  %v33_v5 = vld [vmem:[%s622_s2 + $0x8] sm:$0xff]  ;;  %v30_v6 = vld [vmem:[%s621_s1 + $0x10] sm:$0xff]  ;;  %53 = vperm.xlu0 %461, %v35_v2  }
   0x3   :  { %426 = vmatprep.mubr.msk.f32.mxu0 %vm56_vm0, %v28_v1  ;;  %425 = vmatpush3.xpose.msk.msra.mxu0 %vm56_vm0, %v27_v0  ;;  %v34_v7 = vld [vmem:[%s622_s2 + $0x10] sm:$0xff] }
   0x4   :  { %43 = vperm.xlu1 %462, %v33_v5  }
   0x5   :  { %12 = vsyncpa [#allocation3], 0  ;;  %v32_v8 = vld [vmem:[%s622_s2] sm:$0xff]  ;;  %v31_v9 = vld [vmem:[%s621_s1 + $0x18] sm:$0xff]  ;;  %vm189_vm1 = vcmask 261120   ;;  %v506_v35 = vmov 0.0  }
   0x6   :  { %427 = vmatmul.mubr.msk.f32.vlgmr.msra.gmra.mxu0 %vm56_vm0, %v29_v3  ;;  %48 = vperm.xlu0 %461, %v34_v7   ;;  %v168_v10 = vld [vmem:[%s624_s4 + $0x18] sm:$0xff]  ;;  %v167_v11 = vld [vmem:[%s624_s4 + $0x10] sm:$0xff]  ;;  %v166_v12 = vld [vmem:[%s624_s4 + $0x8] sm:$0xff]  ;;  %vm507_vm2 = vmmov 0   ;;  %s508_s9 = smov [#allocation2]   ;;  %vm380_vm3 = vcmask 64512  }
   0x7   :  { %429 = vmatprep.mubr.msk.f32.mxu0 %vm56_vm0, %v30_v6  ;;  %v165_v13 = vld [vmem:[%s624_s4] sm:$0xff]  ;;  %v162_v32 = vld [vmem:[%s623_s3 + $0x8] sm:$0xff]  ;;  %v163_v33 = vld [vmem:[%s623_s3 + $0x10] sm:$0xff]  ;;  %446 = vmatprep.subr.mxu0 %v506_v35  ;;  %s388_s10 = sshll.u32 %s508_s9, 4  ;;  %s389_s10 = int_to_ptr.vmem [resolvable:$true] %s388_s10 }
   0x8   :  { %38 = vperm.xlu1 %462, %v32_v8   ;;  %v292_v14 = vld [vmem:[%s626_s6] sm:$0xff]  ;;  %v164_v34 = vld [vmem:[%s623_s3 + $0x18] sm:$0xff]  ;;  %p488_p1 = scmp.lt.s32.totalorder %s389_s10, %s389_s10 }
   0x9   :  { %v161_v15 = vld [vmem:[%s623_s3] sm:$0xff] }
   0xa   :  { %430 = vmatmul.mubr.msk.f32.gmra.mxu0 %vm56_vm0, %v31_v9  ;;  %186 = vperm.xlu0 %461, %v168_v10   ;;  %v291_v51 = vld [vmem:[%s625_s5] sm:$0xff]  ;;  %s483_s5 = scalar_lea.vmem %s389_s10, 128 }
   0xb   :  { %440 = vmatprep.mubr.msk.f32.mxu1 %vm189_vm1, %v161_v15  ;;  %454 = vmatprep.mubr.msk.f32.mxu0 %vm507_vm2, %v506_v35  ;;  %p484_p0 = scmp.ne.s32.totalorder %s389_s10, %s483_s5  ;;  %p489_p2 = scmp.lt.s32.totalorder %s483_s5, %s483_s5 }
   0xc   :  { %181 = vperm.xlu1 %462, %v167_v11  }
   0xd   :  { %p490_p3 = por %p489_p2, %p488_p1 }
   0xe   :  { %176 = vperm.xlu0 %461, %v166_v12  }
   0xf   :  { %p491_p4 = pnand %p490_p3, %p484_p0 }
  0x10   :  { %171 = vperm.xlu1 %462, %v165_v13  }
  0x12   :  { %295 = vperm.xlu0 %461, %v292_v14  }
  0x7d   :  { %v54_v16 = vpop.permute.xlu0 %53 }
  0x7f   :  { %v44_v18 = vpop.permute.xlu1 %43 }
  0x81   :  { %v49_v22 = vpop.permute.xlu0 %48 }
  0x83   :  { %v39_v26 = vpop.permute.xlu1 %38 }
  0x85   :  { %v187_v36 = vpop.permute.xlu0 %186 }
  0x87   :  { %v182_v38 = vpop.permute.xlu1 %181 }
  0x89   :  { %v177_v42 = vpop.permute.xlu0 %176 }
  0x8b   :  { %v172_v46 = vpop.permute.xlu1 %171 }
  0x8d   :  { %v296_v53 = vpop.permute.xlu0 %295 }
  0xc6   :  { %v428_v17 = vpop.f32.mrf.mxu0 }
  0xc7   :  { %v144_v24 = vadd.f32 %v428_v17, %v44_v18 }
  0xc8   :  { %v138_v19 = vpop.f32.mrf.mxu0 }
  0xc9   :  { %v139_v27 = vadd.f32 %v138_v19, %v39_v26 }
  0xca   :  { %v431_v20 = vpop.f32.mrf.mxu0 }
  0xcb   :  { %v154_v21 = vadd.f32 %v431_v20, %v54_v16 }
  0xcc   :  { %v148_v23 = vpop.f32.mrf.mxu0 }
  0xcd   :  { %463 = vtanh.f32 %v154_v21  ;;  %v149_v25 = vadd.f32 %v148_v23, %v49_v22 }
  0xcf   :  { %465 = vtanh.f32 %v149_v25 }
  0xd0   :  { %467 = vtanh.f32 %v144_v24 }
  0xd1   :  { %469 = vtanh.f32 %v139_v27 }
  0xda   :  { %v464_v28 = vpop.eup %463 }
  0xdb   :  { %432 = vmatprep.subr.mxu1 %v464_v28 }
  0xdc   :  { %v466_v29 = vpop.eup %465  ;;  %433 = vmatpush3.msra.mxu1 %v464_v28 }
  0xdd   :  { %434 = vmatprep.subr.mxu1 %v466_v29  ;;  %v468_v30 = vpop.eup %467 }
  0xde   :  { %435 = vmatpush3.msra.mxu1 %v466_v29  ;;  %v470_v31 = vpop.eup %469 }
  0xdf   :  { %436 = vmatprep.subr.mxu1 %v468_v30 }
  0xe0   :  { %437 = vmatpush3.msra.mxu1 %v468_v30 }
  0xe1   :  { %438 = vmatprep.subr.mxu1 %v470_v31 }
  0xe2   :  { %439 = vmatpush3.msra.mxu1 %v470_v31 }
  0xe3   :  { %441 = vmatmul.mubr.msk.f32.vlgmr.msra.gmra.mxu1 %vm189_vm1, %v162_v32 }
  0xe4   :  { %443 = vmatprep.mubr.msk.f32.mxu1 %vm189_vm1, %v163_v33 }
  0xe7   :  { %444 = vmatmul.mubr.msk.f32.gmra.mxu1 %vm189_vm1, %v164_v34 }
 0x1a3   :  { %v442_v37 = vpop.f32.mrf.mxu1 }
 0x1a4   :  { %v274_v44 = vadd.f32 %v442_v37, %v177_v42 }
 0x1a5   :  { %v268_v39 = vpop.f32.mrf.mxu1 }
 0x1a6   :  { %v269_v47 = vadd.f32 %v268_v39, %v172_v46 }
 0x1a7   :  { %v445_v40 = vpop.f32.mrf.mxu1 }
 0x1a8   :  { %v284_v41 = vadd.f32 %v445_v40, %v187_v36 }
 0x1a9   :  { %v278_v43 = vpop.f32.mrf.mxu1 }
 0x1aa   :  { %471 = vtanh.f32 %v284_v41  ;;  %v279_v45 = vadd.f32 %v278_v43, %v182_v38 }
 0x1ac   :  { %473 = vtanh.f32 %v279_v45 }
 0x1ad   :  { %475 = vtanh.f32 %v274_v44 }
 0x1ae   :  { %477 = vtanh.f32 %v269_v47 }
 0x1b7   :  { %v472_v48 = vpop.eup %471 }
 0x1b8   :  { %447 = vmatpush3.msra.mxu0 %v472_v48 }
 0x1b9   :  { %v474_v49 = vpop.eup %473  ;;  %448 = vmatprep.subr.mxu0 %v506_v35 }
 0x1ba   :  { %449 = vmatpush3.msra.mxu0 %v474_v49  ;;  %v476_v50 = vpop.eup %475 }
 0x1bb   :  { %450 = vmatprep.subr.mxu0 %v506_v35  ;;  %v478_v52 = vpop.eup %477 }
 0x1bc   :  { %451 = vmatpush3.msra.mxu0 %v476_v50 }
 0x1bd   :  { %452 = vmatprep.subr.mxu0 %v506_v35 }
 0x1be   :  { %453 = vmatpush3.msra.mxu0 %v478_v52 }
 0x1bf   :  { %455 = vmatmul.mubr.msk.f32.vlgmr.msra.gmra.mxu0 %vm189_vm1, %v291_v51 }
 0x27f   :  { %v367_v54 = vpop.f32.mrf.mxu0 }
 0x280   :  { %v368_v55 = vadd.f32 %v367_v54, %v296_v53 }
 0x281   :  { %v456_v56 = vpop.f32.mrf.mxu0 }
 0x282   :  { %v372_v57 = vand.u32 2147483647, %v368_v55  ;;  %v371_v63 = vmax.f32 %v368_v55, 0.0 }
 0x284   :  { %v373_v58 = vsub.f32 0.0, %v372_v57 }
 0x286   :  { %v374_v59 = vmul.f32 1.442695, %v373_v58 }
 0x288   :  { %479 = vpow2.f32 %v374_v59 }
 0x295   :  { %v480_v60 = vpop.eup %479 }
 0x296   :  { %v376_v61 = vadd.f32 1.0, %v480_v60 }
 0x298   :  { %481 = vlog2.f32 %v376_v61 }
 0x2a5   :  { %v482_v62 = vpop.eup %481 }
 0x2a6   :  { %v378_v0 = vmul.f32 0.6931472, %v482_v62 }
 0x2a8   :  { %v379_v1 = vadd.f32 %v378_v0, %v371_v63 }
 0x2aa   :  { %381 = vst.msk [vmem:[#allocation2] sm:$0xff] %vm380_vm3, %v379_v1 }
 0x2ab   :  { %494 = shalt.err (!%p491_p4)
}
 0x2ac   :  { %391 = dma.vmem_to_hbm [thread:$0]  %s389_s10, 128, %s627_s7, [#allocation3]  }
 0x2ad   :  { %503 = dma.done.wait [#allocation3], 128  }
 0x2ae   :  { %504 = vsyncadd [#allocation3], 4294967168 }
 0x2af   :  { %395 = vsyncpa [#allocation3], 1 }

</bundles_post_ra>
